<compile_context>
chip_gen: v7x
topology: tpu7x:2x2x1
jax: 0.10.0
libtpu: 0.0.40
codegen_flags: <defaults>
</compile_context>

<pallas_src>
import jax
import jax.numpy as jnp
from jax.experimental import pallas as pl
from jax.experimental.pallas import tpu as pltpu


def _lffd_detection_kernel(x_ref,
                           w0_ref, b0_ref,
                           w1_ref, b1_ref,
                           w2_ref, b2_ref,
                           o_ref):
    # x_ref block: (1, Cin, T) -> (Cin, T); pixels live on the lane axis everywhere.
    x = x_ref[0]

    # trunk 1x1 conv + ReLU: (Cmid, Cin) @ (Cin, T) -> (Cmid, T)
    y0 = jnp.dot(w0_ref[...], x, preferred_element_type=jnp.float32) + b0_ref[...]
    y0 = jnp.maximum(y0, 0.0)

    # fused branch hidden layer (bbox | score stacked): (2*Cmid, Cmid) @ (Cmid, T)
    h = jnp.dot(w1_ref[...], y0, preferred_element_type=jnp.float32) + b1_ref[...]
    h = jnp.maximum(h, 0.0)

    # fused block-diagonal output layer -> (6, T); rows 0..3 = bbox, rows 4..5 = score
    o_ref[0] = jnp.dot(w2_ref[...], h, preferred_element_type=jnp.float32) + b2_ref[...]


def lffd_detection_block(x_nchw, params, *, tile_hw=4096):
    """x_nchw: (N, Cin, H, W) float32 -> (N, 6, H, W) float32."""
    N, Cin, H, W = x_nchw.shape
    Cmid = params["w0"].shape[1]
    HW = H * W

    # ---- wrapper-side param packing (tiny; done once per call under jit) ----
    w0t = params["w0"].T                                               # (Cmid, Cin)
    b0 = params["b0"].reshape(Cmid, 1)
    w1t = jnp.concatenate([params["w1b"].T, params["w1s"].T], axis=0)  # (2*Cmid, Cmid)
    b1 = jnp.concatenate([params["b1b"], params["b1s"]], axis=1).reshape(2 * Cmid, 1)
    w2t = jnp.zeros((6, 2 * Cmid), jnp.float32)                        # block-diagonal
    w2t = w2t.at[:4, :Cmid].set(params["w2b"].T)
    w2t = w2t.at[4:, Cmid:].set(params["w2s"].T)
    b2 = jnp.concatenate([params["b2b"], params["b2s"]], axis=1).reshape(6, 1)

    # ---- choose a lane-dense pixel tile (multiple of 128), pad pixel axis if needed ----
    tile = max(128, min(int(tile_hw), pl.cdiv(HW, 128) * 128))
    tile = (tile // 128) * 128
    HWp = pl.cdiv(HW, tile) * tile

    x3 = x_nchw.reshape(N, Cin, HW)
    if HWp != HW:
        x3 = jnp.pad(x3, ((0, 0), (0, 0), (0, HWp - HW)))
    num_tiles = HWp // tile

    full2d = lambda shape: pl.BlockSpec(shape, lambda n, j: (0, 0))

    out3 = pl.pallas_call(
        _lffd_detection_kernel,
        out_shape=jax.ShapeDtypeStruct((N, 6, HWp), jnp.float32),
        grid_spec=pltpu.PrefetchScalarGridSpec(
            num_scalar_prefetch=0,
            grid=(N, num_tiles),
            in_specs=[
                pl.BlockSpec((1, Cin, tile), lambda n, j: (n, 0, j)),  # x tile
                full2d((Cmid, Cin)),      full2d((Cmid, 1)),           # trunk conv
                full2d((2 * Cmid, Cmid)), full2d((2 * Cmid, 1)),       # fused mid conv
                full2d((6, 2 * Cmid)),    full2d((6, 1)),              # fused out conv
            ],
            out_specs=pl.BlockSpec((1, 6, tile), lambda n, j: (n, 0, j)),
        ),
        compiler_params=pltpu.CompilerParams(
            dimension_semantics=("parallel", "parallel")),
    )(x3, w0t, b0, w1t, b1, w2t, b2)

    if HWp != HW:
        out3 = out3[:, :, :HW]
    return out3.reshape(N, 6, H, W)


def _init_params(key, in_channels, mid_channels):
    """Deterministic synthetic params. Weights stored as (C_in, C_out) (== PyTorch
    1x1 conv weight (C_out, C_in, 1, 1) transposed); biases as (1, C_out)."""
    ks = jax.random.split(key, 10)
    def w(k, cin, cout):
        return (jax.random.normal(k, (cin, cout), jnp.float32) / jnp.sqrt(cin)).astype(jnp.float32)
    def b(k, cout):
        return 0.1 * jax.random.normal(k, (1, cout), jnp.float32)
    return {
        "w0":  w(ks[0], in_channels, mid_channels),  "b0":  b(ks[1], mid_channels),
        "w1b": w(ks[2], mid_channels, mid_channels), "b1b": b(ks[3], mid_channels),
        "w2b": w(ks[4], mid_channels, 4),            "b2b": b(ks[5], 4),
        "w1s": w(ks[6], mid_channels, mid_channels), "b1s": b(ks[7], mid_channels),
        "w2s": w(ks[8], mid_channels, 2),            "b2s": b(ks[9], 2),
    }


def _reference(x_nchw, p):
    """Pure-JAX reference mirroring the PyTorch forward (bias=True, normalization=None)."""
    N, Cin, H, W = x_nchw.shape
    x = jnp.transpose(x_nchw, (0, 2, 3, 1)).reshape(-1, Cin)
    y0 = jnp.maximum(x @ p["w0"] + p["b0"], 0.0)
    hb = jnp.maximum(y0 @ p["w1b"] + p["b1b"], 0.0)
    bbox = hb @ p["w2b"] + p["b2b"]
    hs = jnp.maximum(y0 @ p["w1s"] + p["b1s"], 0.0)
    score = hs @ p["w2s"] + p["b2s"]
    out = jnp.concatenate([bbox, score], axis=-1)
    return jnp.transpose(out.reshape(N, H, W, 6), (0, 3, 1, 2))


if __name__ == "__main__":
    key = jax.random.PRNGKey(0)
    k_x, k_p = jax.random.split(key)

    N, Cin, Cmid, H, W = 2, 8, 16, 16, 16     # small, consistent with LffdDetectionBlock
    x = jax.random.normal(k_x, (N, Cin, H, W), jnp.float32)
    params = _init_params(k_p, Cin, Cmid)

    out = jax.block_until_ready(lffd_detection_block(x, params))
    ref = jax.block_until_ready(_reference(x, params))

    assert out.shape == (N, 6, H, W), out.shape
    assert jnp.allclose(out, ref, atol=1e-4, rtol=1e-4), "mismatch vs reference"
    print("KERNEL_OK")
</pallas_src>

<mosaic_0001>
module attributes {stable_mosaic.version = 11 : i64} {
  func.func @_lffd_detection_kernel(%arg0: i32, %arg1: i32, %arg2: memref<1x8x256xf32, #tpu.memory_space<vmem>>, %arg3: memref<16x8xf32, #tpu.memory_space<vmem>>, %arg4: memref<16x1xf32, #tpu.memory_space<vmem>>, %arg5: memref<32x16xf32, #tpu.memory_space<vmem>>, %arg6: memref<32x1xf32, #tpu.memory_space<vmem>>, %arg7: memref<6x32xf32, #tpu.memory_space<vmem>>, %arg8: memref<6x1xf32, #tpu.memory_space<vmem>>, %arg9: memref<1x6x256xf32, #tpu.memory_space<vmem>>) attributes {dimension_semantics = [#tpu.dimension_semantics<parallel>, #tpu.dimension_semantics<parallel>], iteration_bounds = array<i64: 2, 1>, scalar_prefetch = 0 : i64, scratch_operands = 0 : i64, tpu.core_type = #tpu.core_type<tc>, window_params = [{transform_indices = @transform_0, window_bounds = array<i64: 1, 8, 256>}, {pipeline_mode = #tpu.pipeline_mode<synchronous>, transform_indices = @transform_1, window_bounds = array<i64: 16, 8>}, {pipeline_mode = #tpu.pipeline_mode<synchronous>, transform_indices = @transform_2, window_bounds = array<i64: 16, 1>}, {pipeline_mode = #tpu.pipeline_mode<synchronous>, transform_indices = @transform_3, window_bounds = array<i64: 32, 16>}, {pipeline_mode = #tpu.pipeline_mode<synchronous>, transform_indices = @transform_4, window_bounds = array<i64: 32, 1>}, {pipeline_mode = #tpu.pipeline_mode<synchronous>, transform_indices = @transform_5, window_bounds = array<i64: 6, 32>}, {pipeline_mode = #tpu.pipeline_mode<synchronous>, transform_indices = @transform_6, window_bounds = array<i64: 6, 1>}, {transform_indices = @transform_7, window_bounds = array<i64: 1, 6, 256>}]} {
    %c0 = arith.constant 0 : index
    %c0_0 = arith.constant 0 : index
    %c0_1 = arith.constant 0 : index
    %0 = vector.load %arg2[%c0, %c0_0, %c0_1] : memref<1x8x256xf32, #tpu.memory_space<vmem>>, vector<1x8x256xf32>
    %1 = vector.shape_cast %0 : vector<1x8x256xf32> to vector<8x256xf32>
    %c0_2 = arith.constant 0 : index
    %c0_3 = arith.constant 0 : index
    %2 = vector.load %arg3[%c0_2, %c0_3] : memref<16x8xf32, #tpu.memory_space<vmem>>, vector<16x8xf32>
    %cst = arith.constant dense<0.000000e+00> : vector<16x256xf32>
    %3 = tpu.matmul %2, %1, %cst {dimension_numbers = #tpu.dot_dimension_numbers<[1], [0], [0], [1], [0, 0, 1, 1], [], []>} : vector<16x8xf32>, vector<8x256xf32>, vector<16x256xf32> -> vector<16x256xf32>
    %c0_4 = arith.constant 0 : index
    %c0_5 = arith.constant 0 : index
    %4 = vector.load %arg4[%c0_4, %c0_5] : memref<16x1xf32, #tpu.memory_space<vmem>>, vector<16x1xf32>
    %5 = vector.broadcast %4 : vector<16x1xf32> to vector<16x256xf32>
    %6 = arith.addf %3, %5 : vector<16x256xf32>
    %cst_6 = arith.constant 0.000000e+00 : f32
    %7 = vector.broadcast %cst_6 : f32 to vector<16x256xf32>
    %8 = arith.maximumf %6, %7 : vector<16x256xf32>
    %c0_7 = arith.constant 0 : index
    %c0_8 = arith.constant 0 : index
    %9 = vector.load %arg5[%c0_7, %c0_8] : memref<32x16xf32, #tpu.memory_space<vmem>>, vector<32x16xf32>
    %cst_9 = arith.constant dense<0.000000e+00> : vector<32x256xf32>
    %10 = tpu.matmul %9, %8, %cst_9 {dimension_numbers = #tpu.dot_dimension_numbers<[1], [0], [0], [1], [0, 0, 1, 1], [], []>} : vector<32x16xf32>, vector<16x256xf32>, vector<32x256xf32> -> vector<32x256xf32>
    %c0_10 = arith.constant 0 : index
    %c0_11 = arith.constant 0 : index
    %11 = vector.load %arg6[%c0_10, %c0_11] : memref<32x1xf32, #tpu.memory_space<vmem>>, vector<32x1xf32>
    %12 = vector.broadcast %11 : vector<32x1xf32> to vector<32x256xf32>
    %13 = arith.addf %10, %12 : vector<32x256xf32>
    %cst_12 = arith.constant 0.000000e+00 : f32
    %14 = vector.broadcast %cst_12 : f32 to vector<32x256xf32>
    %15 = arith.maximumf %13, %14 : vector<32x256xf32>
    %c0_13 = arith.constant 0 : index
    %c0_14 = arith.constant 0 : index
    %16 = vector.load %arg7[%c0_13, %c0_14] : memref<6x32xf32, #tpu.memory_space<vmem>>, vector<6x32xf32>
    %cst_15 = arith.constant dense<0.000000e+00> : vector<6x256xf32>
    %17 = tpu.matmul %16, %15, %cst_15 {dimension_numbers = #tpu.dot_dimension_numbers<[1], [0], [0], [1], [0, 0, 1, 1], [], []>} : vector<6x32xf32>, vector<32x256xf32>, vector<6x256xf32> -> vector<6x256xf32>
    %c0_16 = arith.constant 0 : index
    %c0_17 = arith.constant 0 : index
    %18 = vector.load %arg8[%c0_16, %c0_17] : memref<6x1xf32, #tpu.memory_space<vmem>>, vector<6x1xf32>
    %19 = vector.broadcast %18 : vector<6x1xf32> to vector<6x256xf32>
    %20 = arith.addf %17, %19 : vector<6x256xf32>
    %c0_18 = arith.constant 0 : index
    %c0_19 = arith.constant 0 : index
    %c0_20 = arith.constant 0 : index
    %21 = vector.load %arg9[%c0_18, %c0_19, %c0_20] : memref<1x6x256xf32, #tpu.memory_space<vmem>>, vector<1x6x256xf32>
    %22 = vector.shape_cast %21 : vector<1x6x256xf32> to vector<6x256xf32>
    %23 = vector.shape_cast %20 : vector<6x256xf32> to vector<1x6x256xf32>
    tpu.vector_store %arg9[%c0_18, %c0_19, %c0_20], %23 {strides = array<i32>} : memref<1x6x256xf32, #tpu.memory_space<vmem>>, vector<1x6x256xf32>,
    return
  }
  func.func @transform_0(%arg0: i32, %arg1: i32) -> (i32, i32, i32) {
    %c0_i32 = arith.constant 0 : i32
    %c0_i32_0 = arith.constant 0 : i32
    return %arg0, %c0_i32, %arg1 : i32, i32, i32
  }
  func.func @transform_1(%arg0: i32, %arg1: i32) -> (i32, i32) {
    %c0_i32 = arith.constant 0 : i32
    %c0_i32_0 = arith.constant 0 : i32
    %c0_i32_1 = arith.constant 0 : i32
    return %c0_i32, %c0_i32_0 : i32, i32
  }
  func.func @transform_2(%arg0: i32, %arg1: i32) -> (i32, i32) {
    %c0_i32 = arith.constant 0 : i32
    %c0_i32_0 = arith.constant 0 : i32
    %c0_i32_1 = arith.constant 0 : i32
    return %c0_i32, %c0_i32_0 : i32, i32
  }
  func.func @transform_3(%arg0: i32, %arg1: i32) -> (i32, i32) {
    %c0_i32 = arith.constant 0 : i32
    %c0_i32_0 = arith.constant 0 : i32
    %c0_i32_1 = arith.constant 0 : i32
    return %c0_i32, %c0_i32_0 : i32, i32
  }
  func.func @transform_4(%arg0: i32, %arg1: i32) -> (i32, i32) {
    %c0_i32 = arith.constant 0 : i32
    %c0_i32_0 = arith.constant 0 : i32
    %c0_i32_1 = arith.constant 0 : i32
    return %c0_i32, %c0_i32_0 : i32, i32
  }
  func.func @transform_5(%arg0: i32, %arg1: i32) -> (i32, i32) {
    %c0_i32 = arith.constant 0 : i32
    %c0_i32_0 = arith.constant 0 : i32
    %c0_i32_1 = arith.constant 0 : i32
    return %c0_i32, %c0_i32_0 : i32, i32
  }
  func.func @transform_6(%arg0: i32, %arg1: i32) -> (i32, i32) {
    %c0_i32 = arith.constant 0 : i32
    %c0_i32_0 = arith.constant 0 : i32
    %c0_i32_1 = arith.constant 0 : i32
    return %c0_i32, %c0_i32_0 : i32, i32
  }
  func.func @transform_7(%arg0: i32, %arg1: i32) -> (i32, i32, i32) {
    %c0_i32 = arith.constant 0 : i32
    %c0_i32_0 = arith.constant 0 : i32
    return %arg0, %c0_i32, %arg1 : i32, i32, i32
  }
}

</mosaic_0001>

<bundles_post_ra>
// kernel: tpu_custom_call.1
= control target key start
LH: loop header
LB: loop body
LE: loop exit
PB: predicated region body
PF: predicated region fallthrough
CT: control target
= control target key end

     0   :  { %s857_s24 = smov 0   ;;  %s859_s25 = smov 0   ;;  %s939_s0 = inlined_call_operand.vmem [shape: f32[2,8,256], index: 0, kind: input, shape index: {}]   ;;  %s940_s1 = inlined_call_operand.vmem [shape: f32[16,8], index: 1, kind: input, shape index: {}]   ;;  %s941_s2 = inlined_call_operand.vmem [shape: f32[16,1], index: 2, kind: input, shape index: {}]   ;;  %s942_s3 = inlined_call_operand.vmem [shape: f32[32,16], index: 3, kind: input, shape index: {}]   ;;  %s943_s4 = inlined_call_operand.vmem [shape: f32[32,1], index: 4, kind: input, shape index: {}]   ;;  %s944_s5 = inlined_call_operand.vmem [shape: f32[6,32], index: 5, kind: input, shape index: {}]   ;;  %s945_s6 = inlined_call_operand.vmem [shape: f32[6,1], index: 6, kind: input, shape index: {}]   ;;  %s946_s7 = inlined_call_operand.vmem [shape: f32[2,6,256], index: 7, kind: output, shape index: {}]  }
   0x1   :  { %s861_s26 = smov 0  }
   0x2 LB: > { %s29_s27 = sadd.s32 1, %s809_s25  ;;  %p735_p0 = scmp.ge.s32.totalorder %s813_s26, 1  ;;  %s813_s26 = sphi %s861_s26, %s17_s26   ;;  %s809_s25 = sphi %s859_s25, %s948_s25   ;;  %s805_s24 = sphi %s857_s24, %s947_s24  }
   0x3   : > { %p31_p1 = scmp.ge.s32.totalorder %s29_s27, 2  ;;  %p258_p2 = scmp.lt.s32.totalorder %s813_s26, 3 }
   0x5   : > { %s950_s27 = smov (%p31_p1, %s29_s27), 0  ;;  %p259_p3 = pnand %p735_p0, %p258_p2 }
   0x6   : > { %p299_p4 = scmp.lt.s32.totalorder (!%p259_p3), %s805_s24, 1  ;;  %v815_v0 = vmov (!%p259_p3), 0.0   ;;  %v816_v1 = vmov (!%p259_p3), 0   ;;  %v322_v2 = vld [vmem:[%s941_s2] sm:$0xff] (!%p259_p3)  ;;  %v323_v3 = vld [vmem:[%s941_s2 + $0x8] sm:$0xff] (!%p259_p3)  ;;  %vm334_vm0 = vcmask (!%p259_p3), 64512  }
   0x7   : > { %262 = sbr.rel (%p259_p3) target bundleno = 698 (0x2ba), region = 48  ;;  %405 = vmatprep.mubr.f32.mxu0 (!%p259_p3), %v815_v0  ;;  %789 = vset.pattern.permute.xlu0 (!%p259_p3), %v816_v1  ;;  %v320_v6 = vld [vmem:[%s940_s1] sm:$0xff] (!%p259_p3)  ;;  %v428_v7 = vld [vmem:[%s943_s4 + $0x10] sm:$0xff] (!%p259_p3)  ;;  %v321_v8 = vld [vmem:[%s940_s1 + $0x8] sm:$0xff] (!%p259_p3)  ;;  %vm450_vm1 = vcmask (!%p259_p3), 130048   ;;  %vm567_vm2 = vcmask (!%p259_p3), 261120  }
   0x8   : > { %326 = vperm.xlu0 (!%p259_p3), %789, %v322_v2   ;;  %527 = vmatprep.mubr.f32.mxu1 (!%p259_p3), %v815_v0  ;;  %v561_v9 = vld [vmem:[%s945_s6] sm:$0x3f] (!%p259_p3)  ;;  %v427_v11 = vld [vmem:[%s943_s4 + $0x8] sm:$0xff] (!%p259_p3)  ;;  %v429_v12 = vld [vmem:[%s943_s4 + $0x18] sm:$0xff] (!%p259_p3) }
   0x9   : > { %790 = vset.pattern.permute.xlu1 (!%p259_p3), %v816_v1  ;;  %v426_v10 = vld [vmem:[%s943_s4] sm:$0xff] (!%p259_p3)  ;;  %v423_v30 = vld [vmem:[%s942_s3 + $0x8] sm:$0xff] (!%p259_p3)  ;;  %v424_v31 = vld [vmem:[%s942_s3 + $0x10] sm:$0xff] (!%p259_p3) }
   0xa   : > { %432 = vperm.xlu1 (!%p259_p3), %790, %v426_v10   ;;  %v422_v29 = vld [vmem:[%s942_s3] sm:$0xff] (!%p259_p3)  ;;  %v425_v32 = vld [vmem:[%s942_s3 + $0x18] sm:$0xff] (!%p259_p3) }
   0xb   : > { %v560_v1 = vld [vmem:[%s944_s5] sm:$0x3f] (!%p259_p3) }
   0xc   : > { %331 = vperm.xlu0 (!%p259_p3), %789, %v323_v3  }
   0xe   : > { %s952_s24 = smov (!%p299_p4, %s805_s24), 1  ;;  %437 = vperm.xlu1 %790, %v427_v11  }
   0xf   : > { %s749_s9 = sshll.u32 %s952_s24, 4 }
  0x10   : > { %s306_s12 = scalar_lea.vmem %s939_s0, %s749_s9  ;;  %442 = vperm.xlu0 %789, %v428_v7   ;;  %s316_s21 = scalar_lea.vmem %s946_s7, %s749_s9 }
  0x11   : > { %v319_v4 = vld [vmem:[%s306_s12 + $0x8] sm:$0xff]  ;;  %v318_v5 = vld [vmem:[%s306_s12] sm:$0xff] }
  0x12   : > { %341 = vmatprep.subr.mxu0 %v319_v4  ;;  %447 = vperm.xlu1 %790, %v429_v12  }
  0x13   : > { %342 = vmatpush1.msra.mxu0 %v318_v5 }
  0x14   : > { %740 = vmatmul.mubr.msk.f32.vlgmr.msra.gmra.mrb[0].mxu0 %vm334_vm0, %v320_v6  ;;  %564 = vperm.xlu0 %789, %v561_v9  }
  0x15   : > { %411 = vmatprep.mubr.f32.mxu0 %v815_v0 }
  0x18   : > { %741 = vmatmul.mubr.msk.f32.gmra.mrb[2].mxu0 %vm334_vm0, %v321_v8 }
  0x19   : > { %635 = vmatprep.mubr.f32.mxu0 %v815_v0 }
  0x87   : > { %v327_v13 = vpop.permute.xlu0 %326 }
  0x89   : > { %v433_v33 = vpop.permute.xlu1 %432 }
  0x8b   : > { %v332_v17 = vpop.permute.xlu0 %331 }
  0x8d   : > { %v438_v37 = vpop.permute.xlu1 %437 }
  0x8f   : > { %v443_v50 = vpop.permute.xlu0 %442 }
  0x91   : > { %v448_v53 = vpop.permute.xlu1 %447 }
  0x93   : > { %v565_v2 = vpop.permute.xlu0 %564 }
  0xe7   : > { %v407_v14 = vpop.f32.mrb[0].mxu0 }
  0xe8   : > { %v409_v15 = vpop.f32.mrb[1].mxu0  ;;  %v408_v16 = vadd.f32 %v407_v14, %v327_v13 }
  0xe9   : > { %v410_v18 = vadd.f32 %v409_v15, %v327_v13 }
  0xea   : > { %v418_v23 = vmax.f32 %v408_v16, 0.0 }
  0xeb   : > { %v413_v19 = vpop.f32.mrb[2].mxu0  ;;  %v419_v25 = vmax.f32 %v410_v18, 0.0 }
  0xec   : > { %v414_v20 = vadd.f32 %v413_v19, %v332_v17  ;;  %v415_v21 = vpop.f32.mrb[3].mxu0 }
  0xed   : > { %v416_v22 = vadd.f32 %v415_v21, %v332_v17 }
  0xee   : > { %v420_v24 = vmax.f32 %v414_v20, 0.0 }
  0xef   : > { %v421_v26 = vmax.f32 %v416_v22, 0.0 }
  0xf0   : > { %v753_v27 = vpack.c.bf16 %v420_v24, %v418_v23 }
  0xf1   : > { %v751_v28 = vpack.c.bf16 %v421_v26, %v419_v25 }
  0xf3   : > { %752 = vmatprep.subr.bf16.mxu1 %v751_v28 }
  0xf4   : > { %754 = vmatpush1.bf16.msra.mxu1 %v753_v27 }
  0xf7   : > { %742 = vmatmul.mubr.msk.f32.vlgmr.msra.gmra.mrb[0].mxu1 %vm450_vm1, %v422_v29 }
  0xf8   : > { %533 = vmatprep.mubr.f32.mxu1 %v815_v0 }
  0xfb   : > { %743 = vmatmul.mubr.msk.f32.gmra.mrb[2].mxu1 %vm450_vm1, %v423_v30 }
  0xfc   : > { %539 = vmatprep.mubr.f32.mxu1 %v815_v0 }
  0xff   : > { %744 = vmatmul.mubr.msk.f32.gmra.mrb[4].mxu1 %vm450_vm1, %v424_v31 }
 0x100   : > { %545 = vmatprep.mubr.f32.mxu1 %v815_v0 }
 0x103   : > { %745 = vmatmul.mubr.msk.f32.gmra.mrb[6].mxu1 %vm450_vm1, %v425_v32 }
 0x1ca   : > { %v529_v34 = vpop.f32.mrb[0].mxu1 }
 0x1cb   : > { %v531_v35 = vpop.f32.mrb[1].mxu1  ;;  %v530_v36 = vadd.f32 %v529_v34, %v433_v33 }
 0x1cc   : > { %v532_v38 = vadd.f32 %v531_v35, %v433_v33 }
 0x1cd   : > { %v552_v43 = vmax.f32 %v530_v36, 0.0 }
 0x1ce   : > { %v535_v39 = vpop.f32.mrb[2].mxu1  ;;  %v553_v45 = vmax.f32 %v532_v38, 0.0 }
 0x1cf   : > { %v536_v40 = vadd.f32 %v535_v39, %v438_v37  ;;  %v537_v41 = vpop.f32.mrb[3].mxu1 }
 0x1d0   : > { %v538_v42 = vadd.f32 %v537_v41, %v438_v37 }
 0x1d1   : > { %v554_v44 = vmax.f32 %v536_v40, 0.0 }
 0x1d2   : > { %v555_v46 = vmax.f32 %v538_v42, 0.0  ;;  %v541_v47 = vpop.f32.mrb[4].mxu1 }
 0x1d3   : > { %v757_v48 = vpack.c.bf16 %v554_v44, %v552_v43  ;;  %v543_v49 = vpop.f32.mrb[5].mxu1  ;;  %v542_v52 = vadd.f32 %v541_v47, %v443_v50 }
 0x1d4   : > { %v755_v51 = vpack.c.bf16 %v555_v46, %v553_v45  ;;  %v544_v54 = vadd.f32 %v543_v49, %v443_v50 }
 0x1d5   : > { %v556_v59 = vmax.f32 %v542_v52, 0.0 }
 0x1d6   : > { %v547_v55 = vpop.f32.mrb[6].mxu1  ;;  %756 = vmatprep.subr.bf16.mxu0 %v755_v51  ;;  %v557_v61 = vmax.f32 %v544_v54, 0.0 }
 0x1d7   : > { %v548_v56 = vadd.f32 %v547_v55, %v448_v53  ;;  %v549_v57 = vpop.f32.mrb[7].mxu1  ;;  %758 = vmatpush1.bf16.msra.mxu0 %v757_v48 }
 0x1d8   : > { %v550_v58 = vadd.f32 %v549_v57, %v448_v53 }
 0x1d9   : > { %v558_v60 = vmax.f32 %v548_v56, 0.0 }
 0x1da   : > { %v559_v62 = vmax.f32 %v550_v58, 0.0 }
 0x1db   : > { %v761_v63 = vpack.c.bf16 %v558_v60, %v556_v59 }
 0x1dc   : > { %v759_v0 = vpack.c.bf16 %v559_v62, %v557_v61 }
 0x1de   : > { %760 = vmatprep.subr.bf16.mxu0 %v759_v0 }
 0x1df   : > { %762 = vmatpush1.bf16.msra.mxu0 %v761_v63 }
 0x1e2   : > { %746 = vmatmul.mubr.msk.f32.vlgmr.msra.gmra.mrb[4].mxu0 %vm567_vm2, %v560_v1 }
 0x2b5   : > { %v637_v3 = vpop.f32.mrb[4].mxu0 }
 0x2b6   : > { %v638_v4 = vadd.f32 %v637_v3, %v565_v2  ;;  %v639_v5 = vpop.f32.mrb[5].mxu0 }
 0x2b7   : > { %v640_v6 = vadd.f32 %v639_v5, %v565_v2 }
 0x2b8   : > { %642 = vst [vmem:[%s316_s21] sm:$0x3f] %v638_v4 }
 0x2b9   : > { %643 = vst [vmem:[%s316_s21 + $0x8] sm:$0x3f] %v640_v6 }
 0x2ba PF: > { %s17_s26 = sadd.s32 1, %s813_s26   ;;  %s947_s24 = smov %s809_s25 }
 0x2bb   : > { %p14_p5 = scmp.ge.s32.totalorder %s17_s26, 4   ;;  %s948_s25 = smov %s950_s27 }
 0x2bd   :  { %16 = sbr.rel (!%p14_p5) target bundleno = 2 (0x2), region = 78 }

</bundles_post_ra>
